<compile_context>
chip_gen: v7x
topology: tpu7x:2x2x1
jax: 0.10.0
libtpu: 0.0.40
codegen_flags: <defaults>
</compile_context>

<pallas_src>
import functools

import jax
import jax.numpy as jnp
from jax import lax
from jax.experimental import pallas as pl
from jax.experimental.pallas import tpu as pltpu


# --------------------------------------------------------------------------------------
# In-kernel helpers
# --------------------------------------------------------------------------------------
def _round_up(n, m):
    return ((n + m - 1) // m) * m


def _gelu_exact(x):
    # Exact (erf-based) GELU, matching torch.nn.GELU() default.
    # erf via Abramowitz-Stegun 7.1.26 (|err| < 1.5e-7); the divide goes to the EUP.
    a1, a2, a3, a4, a5 = 0.254829592, -0.284496736, 1.421413741, -1.453152027, 1.061405429
    p = 0.3275911
    z = x * 0.7071067811865476  # x / sqrt(2)
    s = jnp.where(z >= 0.0, 1.0, -1.0)
    az = jnp.abs(z)
    t = pl.reciprocal(1.0 + p * az, approx=True)
    poly = ((((a5 * t + a4) * t + a3) * t + a2) * t + a1) * t
    erf = s * (1.0 - poly * jnp.exp(-az * az))
    return 0.5 * x * (1.0 + erf)


# --------------------------------------------------------------------------------------
# Kernel 1: fused QKV projection + rotary (scale and rotate_half folded into weights)
# --------------------------------------------------------------------------------------
def qkv_rotary_kernel(
    x_ref,     # [1, TQ, D]    f32
    enc_ref,   # [2, 1, TQ, hd] f32  rotary freqs (per-head, not pre-broadcast in HBM)
    w5_ref,    # [5, D, D]     cdt  [Wq*s | rot(Wq)*s | Wk | rot(Wk) | Wv]
    b5_ref,    # [5, 1, D]     f32
    t_ref,     # [hd, D]       f32  0/1 head-tiling matrix (f0 @ T broadcasts over heads)
    q_ref,     # [1, TQ, D]    cdt
    k_ref,     # [1, TQ, D]    cdt
    v_ref,     # [1, TQ, D]    cdt
    *,
    compute_dtype,
):
    f32 = jnp.float32
    cdt = compute_dtype

    xb = x_ref[0].astype(cdt)            # [TQ, D]
    enc = enc_ref[...]                   # [2, 1, TQ, hd]

    # Head-broadcast the rotary freqs to full [TQ, D] slabs via a tiny exact 0/1
    # matmul (MXU slot; avoids unaligned lane concats / per-head lane slicing).
    f0 = jnp.dot(enc[0, 0], t_ref[...], preferred_element_type=f32)   # [TQ, D]
    f1 = jnp.dot(enc[1, 0], t_ref[...], preferred_element_type=f32)   # [TQ, D]

    def proj(i):  # split projection: 5 separate K=D dots, no [TQ, 5D] f32 temp
        return jnp.dot(xb, w5_ref[i], preferred_element_type=f32) + b5_ref[i]

    q_ref[0] = (proj(0) * f0 + proj(1) * f1).astype(cdt)   # 1/sqrt(hd) already folded in
    k_ref[0] = (proj(2) * f0 + proj(3) * f1).astype(cdt)
    v_ref[0] = proj(4).astype(cdt)


# --------------------------------------------------------------------------------------
# Kernel 2: attention + out-proj + FFN + residual, per (batch, query tile)
# --------------------------------------------------------------------------------------
def attn_ffn_kernel(
    x_ref,      # [1, TQ, D]   f32
    q_ref,      # [1, TQ, D]   cdt  (rotary + scale applied)
    k_ref,      # [1, Np, D]   cdt
    v_ref,      # [1, Np, D]   cdt
    wout_ref,   # [D, D]       cdt
    bout_ref,   # [1, D]       f32
    w1x_ref,    # [D, 2D]      cdt  ffn1 rows acting on x
    w1m_ref,    # [D, 2D]      cdt  ffn1 rows acting on message
    b1_ref,     # [1, 2D]      f32
    gamma_ref,  # [1, 2D]      f32
    beta_ref,   # [1, 2D]      f32
    w2_ref,     # [2D, D]      cdt
    b2_ref,     # [1, D]       f32
    o_ref,      # [1, TQ, D]   f32
    ctx_ref,    # scratch VMEM [TQ, D] cdt  (per-head contexts -> one K=D out-proj dot)
    *,
    num_heads: int,
    head_dim: int,
    n_valid: int,
    compute_dtype,
    exp_dtype,
):
    f32 = jnp.float32
    cdt = compute_dtype

    xq = x_ref[0]          # [TQ, D] f32 (kept f32 for the residual)
    qt = q_ref[0]          # [TQ, D] cdt
    kt = k_ref[0]          # [Np, D] cdt
    vt = v_ref[0]          # [Np, D] cdt
    n_keys = kt.shape[0]

    # Key-padding mask: only emitted (statically) when the wrapper padded N.
    if n_valid < n_keys:
        key_ids = lax.broadcasted_iota(jnp.int32, (1, n_keys), 1)
        neg = jnp.where(key_ids < n_valid, 0.0, -1e30).astype(f32)
    else:
        neg = None
    # TODO(synk): optional attention mask / adj_mat arguments of the torch module are
    # not plumbed (forward here corresponds to mask=None, adj_mat=None).

    dn = (((1,), (1,)), ((), ()))  # q @ k^T : contract last dims
    for h in range(num_heads):
        lo = h * head_dim
        hi = lo + head_dim
        sim = lax.dot_general(qt[:, lo:hi], kt[:, lo:hi], dn,
                              preferred_element_type=f32)            # [TQ, Np]
        if neg is not None:
            sim = sim + neg
        m = jnp.max(sim, axis=-1, keepdims=True)
        e = jnp.exp((sim - m).astype(exp_dtype))                     # bf16 EUP on v6e/v7x
        l = jnp.sum(e.astype(f32), axis=-1, keepdims=True)
        ctx = jnp.dot(e.astype(cdt), vt[:, lo:hi],
                      preferred_element_type=f32)                    # [TQ, hd]
        ctx = ctx * pl.reciprocal(l, approx=True)                    # normalize AFTER PV
        ctx_ref[:, lo:hi] = ctx.astype(cdt)

    # Out-projection as ONE full-depth (K = D) matmul.
    msg = jnp.dot(ctx_ref[...], wout_ref[...], preferred_element_type=f32) + bout_ref[...]

    # FFN: Linear(2D,2D) -> LayerNorm -> GELU -> Linear(2D,D), residual.
    # cat([x, message]) is replaced by a split first layer: x@W1x + msg@W1m.
    h1 = (jnp.dot(xq.astype(cdt), w1x_ref[...], preferred_element_type=f32)
          + jnp.dot(msg.astype(cdt), w1m_ref[...], preferred_element_type=f32)
          + b1_ref[...])
    mu = jnp.mean(h1, axis=-1, keepdims=True)
    var = jnp.mean((h1 - mu) ** 2, axis=-1, keepdims=True)
    hn = (h1 - mu) * lax.rsqrt(var + 1e-5) * gamma_ref[...] + beta_ref[...]
    hg = _gelu_exact(hn)
    out = jnp.dot(hg.astype(cdt), w2_ref[...], preferred_element_type=f32) + b2_ref[...]

    o_ref[0] = xq + out


# --------------------------------------------------------------------------------------
# Wrapper: parameter-layout glue + the two pallas_calls
# --------------------------------------------------------------------------------------
def _rotate_half_cols(w):
    # rotate_half applied along the LAST axis, as an exact column shuffle:
    # out[..., 2i] = -w[..., 2i+1];  out[..., 2i+1] = w[..., 2i]
    ww = w.reshape(w.shape[:-1] + (-1, 2))
    return jnp.stack([-ww[..., 1], ww[..., 0]], axis=-1).reshape(w.shape)


def _pick_q_tile(n):
    if n <= 128:
        return _round_up(n, 8)
    return 256 if n >= 1024 else 128


def self_block_forward(x, encoding, params, num_heads,
                       matmul_dtype=jnp.bfloat16, exp_dtype=None):
    B, N, D = x.shape
    hd = D // num_heads
    f32 = jnp.float32
    cdt = matmul_dtype
    if exp_dtype is None:
        # bf16 exp uses the v6e/v7x bf16 EUP path; use exp_dtype=jnp.float32 on v5e
        # (no bf16 EUP) or for exact-parity runs.
        exp_dtype = jnp.bfloat16 if cdt == jnp.bfloat16 else jnp.float32

    TQ = _pick_q_tile(N)
    Np = _round_up(N, TQ)
    n_tiles = Np // TQ

    xf = x.astype(f32)
    enc = encoding.reshape(2, B, N, hd).astype(f32)
    if Np != N:  # pad sequence to a tile multiple; padded keys masked in-kernel
        xf = jnp.pad(xf, ((0, 0), (0, Np - N), (0, 0)))
        enc = jnp.pad(enc, ((0, 0), (0, 0), (0, Np - N), (0, 0)))

    # ---- Wqkv: torch [3D, D] with out-dim interleaved as (head, dim, {q,k,v}).
    # Permute to head-major [q | k | v] columns and split.
    Wqkv = params["Wqkv_w"].astype(f32)
    bqkv = params["Wqkv_b"].astype(f32)
    Wp = jnp.transpose(Wqkv.reshape(num_heads, hd, 3, D), (2, 0, 1, 3)).reshape(3 * D, D)
    bp = jnp.transpose(bqkv.reshape(num_heads, hd, 3), (2, 0, 1)).reshape(3, D)
    Wq, Wk, Wv = Wp[:D].T, Wp[D:2 * D].T, Wp[2 * D:].T        # [D_in, D_out]
    bq, bk, bv = bp[0:1], bp[1:2], bp[2:3]                    # [1, D]

    # ---- fold rotate_half (exact column shuffle) and the 1/sqrt(hd) scale into the
    # projection weights: sections are [ Wq*s | rot(Wq)*s | Wk | rot(Wk) | Wv ].
    s = float(hd) ** -0.5
    W5 = jnp.stack([Wq * s, _rotate_half_cols(Wq) * s, Wk, _rotate_half_cols(Wk), Wv],
                   axis=0).astype(cdt)                        # [5, D, D]
    b5 = jnp.stack([bq * s, _rotate_half_cols(bq) * s, bk, _rotate_half_cols(bk), bv],
                   axis=0)                                    # [5, 1, D] f32

    # 0/1 head-tiling matrix so the kernel can broadcast [TQ, hd] freqs to [TQ, D].
    T = jnp.tile(jnp.eye(hd, dtype=f32), (1, num_heads))      # [hd, D]

    # ---- remaining linears: torch [out,in] -> [in,out]; FFN first layer split so the
    # kernel never concatenates [x, message] along the lane axis.
    Wout = params["out_w"].T.astype(cdt)
    bout = params["out_b"].reshape(1, D).astype(f32)
    W1 = params["ffn1_w"].T.astype(f32)
    W1x, W1m = W1[:D].astype(cdt), W1[D:].astype(cdt)
    b1 = params["ffn1_b"].reshape(1, 2 * D).astype(f32)
    gamma = params["ln_g"].reshape(1, 2 * D).astype(f32)
    beta = params["ln_b"].reshape(1, 2 * D).astype(f32)
    W2 = params["ffn2_w"].T.astype(cdt)
    b2 = params["ffn2_b"].reshape(1, D).astype(f32)

    def const_spec(shape):
        zeros = (0,) * len(shape)
        return pl.BlockSpec(shape, lambda b, t: zeros)

    tile_spec = pl.BlockSpec((1, TQ, D), lambda b, t: (b, t, 0))
    kv_spec = pl.BlockSpec((1, Np, D), lambda b, t: (b, 0, 0))
    cparams = pltpu.CompilerParams(
        dimension_semantics=("parallel", "parallel"),
        vmem_limit_bytes=48 * 1024 * 1024,
    )

    # ---- kernel 1: QKV projection + rotary, tiled over (batch, token tile) ----
    proj = functools.partial(qkv_rotary_kernel, compute_dtype=cdt)
    qkv_shape = jax.ShapeDtypeStruct((B, Np, D), cdt)
    q_all, k_all, v_all = pl.pallas_call(
        proj,
        out_shape=(qkv_shape, qkv_shape, qkv_shape),
        grid_spec=pltpu.PrefetchScalarGridSpec(
            num_scalar_prefetch=0,
            grid=(B, n_tiles),
            in_specs=[
                tile_spec,                                            # x
                pl.BlockSpec((2, 1, TQ, hd), lambda b, t: (0, b, t, 0)),  # enc
                const_spec((5, D, D)),                                # W5
                const_spec((5, 1, D)),                                # b5
                const_spec((hd, D)),                                  # T
            ],
            out_specs=(tile_spec, tile_spec, tile_spec),
        ),
        compiler_params=cparams,
    )(xf, enc, W5, b5, T)

    # ---- kernel 2: attention + out-proj + FFN + residual over (batch, q tile) ----
    attn = functools.partial(attn_ffn_kernel, num_heads=num_heads, head_dim=hd,
                             n_valid=N, compute_dtype=cdt, exp_dtype=exp_dtype)
    out = pl.pallas_call(
        attn,
        out_shape=jax.ShapeDtypeStruct((B, Np, D), f32),
        grid_spec=pltpu.PrefetchScalarGridSpec(
            num_scalar_prefetch=0,
            grid=(B, n_tiles),
            in_specs=[
                tile_spec,                 # x
                tile_spec,                 # q (rotary + scaled)
                kv_spec,                   # k (full padded sequence per batch element)
                kv_spec,                   # v
                const_spec((D, D)),        # Wout
                const_spec((1, D)),        # bout
                const_spec((D, 2 * D)),    # W1x
                const_spec((D, 2 * D)),    # W1m
                const_spec((1, 2 * D)),    # b1
                const_spec((1, 2 * D)),    # gamma
                const_spec((1, 2 * D)),    # beta
                const_spec((2 * D, D)),    # W2
                const_spec((1, D)),        # b2
            ],
            out_specs=tile_spec,
            scratch_shapes=[pltpu.VMEM((TQ, D), cdt)],   # ctx_all for the K=D out-proj
        ),
        compiler_params=cparams,
    )(xf, q_all, k_all, v_all, Wout, bout, W1x, W1m, b1, gamma, beta, W2, b2)

    return out[:, :N]


# --------------------------------------------------------------------------------------
# Pure-JAX reference (mirrors the PyTorch forward exactly, torch weight layout)
# --------------------------------------------------------------------------------------
def reference_forward(x, encoding, params, num_heads):
    B, N, D = x.shape
    hd = D // num_heads
    HI = jax.lax.Precision.HIGHEST

    qkv = jnp.einsum("bni,oi->bno", x, params["Wqkv_w"], precision=HI) + params["Wqkv_b"]
    qkv = qkv.reshape(B, N, num_heads, hd, 3).transpose(0, 2, 1, 3, 4)  # [B,H,N,hd,3]
    q, k, v = qkv[..., 0], qkv[..., 1], qkv[..., 2]

    def rot_half(t):
        tr = t.reshape(t.shape[:-1] + (hd // 2, 2))
        x1, x2 = tr[..., 0], tr[..., 1]
        return jnp.stack([-x2, x1], axis=-1).reshape(t.shape)

    q = q * encoding[0] + rot_half(q) * encoding[1]
    k = k * encoding[0] + rot_half(k) * encoding[1]

    sim = jnp.einsum("bhid,bhjd->bhij", q, k, precision=HI) * (hd ** -0.5)
    attn = jax.nn.softmax(sim, axis=-1)
    ctx = jnp.einsum("bhij,bhjd->bhid", attn, v, precision=HI)
    ctx = ctx.transpose(0, 2, 1, 3).reshape(B, N, D)

    msg = jnp.einsum("bni,oi->bno", ctx, params["out_w"], precision=HI) + params["out_b"]
    cat = jnp.concatenate([x, msg], axis=-1)
    h1 = jnp.einsum("bni,oi->bno", cat, params["ffn1_w"], precision=HI) + params["ffn1_b"]
    mu = h1.mean(-1, keepdims=True)
    var = ((h1 - mu) ** 2).mean(-1, keepdims=True)
    hn = (h1 - mu) / jnp.sqrt(var + 1e-5) * params["ln_g"] + params["ln_b"]
    hg = 0.5 * hn * (1.0 + jax.scipy.special.erf(hn / jnp.sqrt(2.0)))
    out = jnp.einsum("bni,oi->bno", hg, params["ffn2_w"], precision=HI) + params["ffn2_b"]
    return x + out


# --------------------------------------------------------------------------------------
if __name__ == "__main__":
    embed_dim, num_heads = 64, 2
    head_dim = embed_dim // num_heads
    D = embed_dim

    key = jax.random.PRNGKey(0)
    ks = jax.random.split(key, 12)

    def nrm(k, shape, scale=0.1):
        return (scale * jax.random.normal(k, shape)).astype(jnp.float32)

    # Deterministic synthetic parameters, torch nn.Linear layout ([out, in]).
    params = {
        "Wqkv_w": nrm(ks[0], (3 * D, D)),
        "Wqkv_b": nrm(ks[1], (3 * D,)),
        "out_w": nrm(ks[2], (D, D)),
        "out_b": nrm(ks[3], (D,)),
        "ffn1_w": nrm(ks[4], (2 * D, 2 * D)),
        "ffn1_b": nrm(ks[5], (2 * D,)),
        "ln_g": (1.0 + 0.05 * jax.random.normal(ks[6], (2 * D,))).astype(jnp.float32),
        "ln_b": nrm(ks[7], (2 * D,)),
        "ffn2_w": nrm(ks[8], (D, 2 * D)),
        "ffn2_b": nrm(ks[9], (D,)),
    }

    # Two configs: N=16 (no padding) and N=13 (exercises the pad + key-mask path).
    for (B, N) in [(2, 16), (2, 13)]:
        kx, ke = jax.random.split(jax.random.fold_in(key, N))
        x = jax.random.normal(kx, (B, N, D), dtype=jnp.float32)
        encoding = jax.random.normal(ke, (2, B, 1, N, head_dim), dtype=jnp.float32)

        ref = reference_forward(x, encoding, params, num_heads)

        # 1) f32-operand run: tight check of the kernel math (fused rotary, masking, FFN).
        out_f32 = jax.block_until_ready(
            self_block_forward(x, encoding, params, num_heads, matmul_dtype=jnp.float32))
        if not jnp.allclose(out_f32, ref, atol=1e-2, rtol=1e-2):
            err = float(jnp.max(jnp.abs(out_f32 - ref)))
            raise AssertionError(
                f"f32 Pallas kernel mismatch vs reference (B={B}, N={N}), max abs err = {err}")

        # 2) bf16-operand / f32-accumulate run (fast MXU path, bf16 softmax exp).
        out_bf16 = jax.block_until_ready(
            self_block_forward(x, encoding, params, num_heads, matmul_dtype=jnp.bfloat16))
        if not jnp.allclose(out_bf16, ref, atol=5e-2, rtol=5e-2):
            err = float(jnp.max(jnp.abs(out_bf16 - ref)))
            raise AssertionError(
                f"bf16 Pallas kernel mismatch vs reference (B={B}, N={N}), max abs err = {err}")

    print("KERNEL_OK")
</pallas_src>

<mosaic_0001>
module attributes {stable_mosaic.version = 11 : i64} {
  func.func @qkv_rotary_kernel(%arg0: i32, %arg1: i32, %arg2: memref<1x16x64xf32, #tpu.memory_space<vmem>>, %arg3: memref<2x1x16x32xf32, #tpu.memory_space<vmem>>, %arg4: memref<5x64x64xf32, #tpu.memory_space<vmem>>, %arg5: memref<5x1x64xf32, #tpu.memory_space<vmem>>, %arg6: memref<32x64xf32, #tpu.memory_space<vmem>>, %arg7: memref<1x16x64xf32, #tpu.memory_space<vmem>>, %arg8: memref<1x16x64xf32, #tpu.memory_space<vmem>>, %arg9: memref<1x16x64xf32, #tpu.memory_space<vmem>>) attributes {dimension_semantics = [#tpu.dimension_semantics<parallel>, #tpu.dimension_semantics<parallel>], iteration_bounds = array<i64: 2, 1>, scalar_prefetch = 0 : i64, scratch_operands = 0 : i64, tpu.core_type = #tpu.core_type<tc>, window_params = [{transform_indices = @transform_0, window_bounds = array<i64: 1, 16, 64>}, {transform_indices = @transform_1, window_bounds = array<i64: 2, 1, 16, 32>}, {pipeline_mode = #tpu.pipeline_mode<synchronous>, transform_indices = @transform_2, window_bounds = array<i64: 5, 64, 64>}, {pipeline_mode = #tpu.pipeline_mode<synchronous>, transform_indices = @transform_3, window_bounds = array<i64: 5, 1, 64>}, {pipeline_mode = #tpu.pipeline_mode<synchronous>, transform_indices = @transform_4, window_bounds = array<i64: 32, 64>}, {transform_indices = @transform_5, window_bounds = array<i64: 1, 16, 64>}, {transform_indices = @transform_6, window_bounds = array<i64: 1, 16, 64>}, {transform_indices = @transform_7, window_bounds = array<i64: 1, 16, 64>}]} {
    %c0 = arith.constant 0 : index
    %c0_0 = arith.constant 0 : index
    %c0_1 = arith.constant 0 : index
    %0 = vector.load %arg2[%c0, %c0_0, %c0_1] : memref<1x16x64xf32, #tpu.memory_space<vmem>>, vector<1x16x64xf32>
    %1 = vector.shape_cast %0 : vector<1x16x64xf32> to vector<16x64xf32>
    %c0_2 = arith.constant 0 : index
    %c0_3 = arith.constant 0 : index
    %c0_4 = arith.constant 0 : index
    %c0_5 = arith.constant 0 : index
    %2 = vector.load %arg3[%c0_2, %c0_3, %c0_4, %c0_5] : memref<2x1x16x32xf32, #tpu.memory_space<vmem>>, vector<2x1x16x32xf32>
    %3 = vector.extract_strided_slice %2 {offsets = [0, 0, 0, 0], sizes = [1, 1, 16, 32], strides = [1, 1, 1, 1]} : vector<2x1x16x32xf32> to vector<1x1x16x32xf32>
    %4 = vector.shape_cast %3 : vector<1x1x16x32xf32> to vector<16x32xf32>
    %c0_6 = arith.constant 0 : index
    %c0_7 = arith.constant 0 : index
    %5 = vector.load %arg6[%c0_6, %c0_7] : memref<32x64xf32, #tpu.memory_space<vmem>>, vector<32x64xf32>
    %cst = arith.constant dense<0.000000e+00> : vector<16x64xf32>
    %6 = tpu.matmul %4, %5, %cst {dimension_numbers = #tpu.dot_dimension_numbers<[1], [0], [0], [1], [0, 0, 1, 1], [], []>} : vector<16x32xf32>, vector<32x64xf32>, vector<16x64xf32> -> vector<16x64xf32>
    %7 = vector.extract_strided_slice %2 {offsets = [1, 0, 0, 0], sizes = [1, 1, 16, 32], strides = [1, 1, 1, 1]} : vector<2x1x16x32xf32> to vector<1x1x16x32xf32>
    %8 = vector.shape_cast %7 : vector<1x1x16x32xf32> to vector<16x32xf32>
    %c0_8 = arith.constant 0 : index
    %c0_9 = arith.constant 0 : index
    %9 = vector.load %arg6[%c0_8, %c0_9] : memref<32x64xf32, #tpu.memory_space<vmem>>, vector<32x64xf32>
    %cst_10 = arith.constant dense<0.000000e+00> : vector<16x64xf32>
    %10 = tpu.matmul %8, %9, %cst_10 {dimension_numbers = #tpu.dot_dimension_numbers<[1], [0], [0], [1], [0, 0, 1, 1], [], []>} : vector<16x32xf32>, vector<32x64xf32>, vector<16x64xf32> -> vector<16x64xf32>
    %c0_11 = arith.constant 0 : index
    %c0_12 = arith.constant 0 : index
    %c0_13 = arith.constant 0 : index
    %11 = vector.load %arg4[%c0_11, %c0_12, %c0_13] : memref<5x64x64xf32, #tpu.memory_space<vmem>>, vector<1x64x64xf32>
    %12 = vector.shape_cast %11 : vector<1x64x64xf32> to vector<64x64xf32>
    %cst_14 = arith.constant dense<0.000000e+00> : vector<16x64xf32>
    %13 = tpu.matmul %1, %12, %cst_14 {dimension_numbers = #tpu.dot_dimension_numbers<[1], [0], [0], [1], [0, 0, 1, 1], [], []>} : vector<16x64xf32>, vector<64x64xf32>, vector<16x64xf32> -> vector<16x64xf32>
    %c0_15 = arith.constant 0 : index
    %c0_16 = arith.constant 0 : index
    %c0_17 = arith.constant 0 : index
    %14 = vector.load %arg5[%c0_15, %c0_16, %c0_17] : memref<5x1x64xf32, #tpu.memory_space<vmem>>, vector<1x1x64xf32>
    %15 = vector.shape_cast %14 : vector<1x1x64xf32> to vector<1x64xf32>
    %16 = vector.broadcast %15 : vector<1x64xf32> to vector<16x64xf32>
    %17 = arith.addf %13, %16 : vector<16x64xf32>
    %18 = arith.mulf %17, %6 : vector<16x64xf32>
    %c1 = arith.constant 1 : index
    %c0_18 = arith.constant 0 : index
    %c0_19 = arith.constant 0 : index
    %19 = vector.load %arg4[%c1, %c0_18, %c0_19] : memref<5x64x64xf32, #tpu.memory_space<vmem>>, vector<1x64x64xf32>
    %20 = vector.shape_cast %19 : vector<1x64x64xf32> to vector<64x64xf32>
    %cst_20 = arith.constant dense<0.000000e+00> : vector<16x64xf32>
    %21 = tpu.matmul %1, %20, %cst_20 {dimension_numbers = #tpu.dot_dimension_numbers<[1], [0], [0], [1], [0, 0, 1, 1], [], []>} : vector<16x64xf32>, vector<64x64xf32>, vector<16x64xf32> -> vector<16x64xf32>
    %c1_21 = arith.constant 1 : index
    %c0_22 = arith.constant 0 : index
    %c0_23 = arith.constant 0 : index
    %22 = vector.load %arg5[%c1_21, %c0_22, %c0_23] : memref<5x1x64xf32, #tpu.memory_space<vmem>>, vector<1x1x64xf32>
    %23 = vector.shape_cast %22 : vector<1x1x64xf32> to vector<1x64xf32>
    %24 = vector.broadcast %23 : vector<1x64xf32> to vector<16x64xf32>
    %25 = arith.addf %21, %24 : vector<16x64xf32>
    %26 = arith.mulf %25, %10 : vector<16x64xf32>
    %27 = arith.addf %18, %26 : vector<16x64xf32>
    %c0_24 = arith.constant 0 : index
    %c0_25 = arith.constant 0 : index
    %c0_26 = arith.constant 0 : index
    %28 = vector.load %arg7[%c0_24, %c0_25, %c0_26] : memref<1x16x64xf32, #tpu.memory_space<vmem>>, vector<1x16x64xf32>
    %29 = vector.shape_cast %28 : vector<1x16x64xf32> to vector<16x64xf32>
    %30 = vector.shape_cast %27 : vector<16x64xf32> to vector<1x16x64xf32>
    tpu.vector_store %arg7[%c0_24, %c0_25, %c0_26], %30 {strides = array<i32>} : memref<1x16x64xf32, #tpu.memory_space<vmem>>, vector<1x16x64xf32>,
    %c2 = arith.constant 2 : index
    %c0_27 = arith.constant 0 : index
    %c0_28 = arith.constant 0 : index
    %31 = vector.load %arg4[%c2, %c0_27, %c0_28] : memref<5x64x64xf32, #tpu.memory_space<vmem>>, vector<1x64x64xf32>
    %32 = vector.shape_cast %31 : vector<1x64x64xf32> to vector<64x64xf32>
    %cst_29 = arith.constant dense<0.000000e+00> : vector<16x64xf32>
    %33 = tpu.matmul %1, %32, %cst_29 {dimension_numbers = #tpu.dot_dimension_numbers<[1], [0], [0], [1], [0, 0, 1, 1], [], []>} : vector<16x64xf32>, vector<64x64xf32>, vector<16x64xf32> -> vector<16x64xf32>
    %c2_30 = arith.constant 2 : index
    %c0_31 = arith.constant 0 : index
    %c0_32 = arith.constant 0 : index
    %34 = vector.load %arg5[%c2_30, %c0_31, %c0_32] : memref<5x1x64xf32, #tpu.memory_space<vmem>>, vector<1x1x64xf32>
    %35 = vector.shape_cast %34 : vector<1x1x64xf32> to vector<1x64xf32>
    %36 = vector.broadcast %35 : vector<1x64xf32> to vector<16x64xf32>
    %37 = arith.addf %33, %36 : vector<16x64xf32>
    %38 = arith.mulf %37, %6 : vector<16x64xf32>
    %c3 = arith.constant 3 : index
    %c0_33 = arith.constant 0 : index
    %c0_34 = arith.constant 0 : index
    %39 = vector.load %arg4[%c3, %c0_33, %c0_34] : memref<5x64x64xf32, #tpu.memory_space<vmem>>, vector<1x64x64xf32>
    %40 = vector.shape_cast %39 : vector<1x64x64xf32> to vector<64x64xf32>
    %cst_35 = arith.constant dense<0.000000e+00> : vector<16x64xf32>
    %41 = tpu.matmul %1, %40, %cst_35 {dimension_numbers = #tpu.dot_dimension_numbers<[1], [0], [0], [1], [0, 0, 1, 1], [], []>} : vector<16x64xf32>, vector<64x64xf32>, vector<16x64xf32> -> vector<16x64xf32>
    %c3_36 = arith.constant 3 : index
    %c0_37 = arith.constant 0 : index
    %c0_38 = arith.constant 0 : index
    %42 = vector.load %arg5[%c3_36, %c0_37, %c0_38] : memref<5x1x64xf32, #tpu.memory_space<vmem>>, vector<1x1x64xf32>
    %43 = vector.shape_cast %42 : vector<1x1x64xf32> to vector<1x64xf32>
    %44 = vector.broadcast %43 : vector<1x64xf32> to vector<16x64xf32>
    %45 = arith.addf %41, %44 : vector<16x64xf32>
    %46 = arith.mulf %45, %10 : vector<16x64xf32>
    %47 = arith.addf %38, %46 : vector<16x64xf32>
    %c0_39 = arith.constant 0 : index
    %c0_40 = arith.constant 0 : index
    %c0_41 = arith.constant 0 : index
    %48 = vector.load %arg8[%c0_39, %c0_40, %c0_41] : memref<1x16x64xf32, #tpu.memory_space<vmem>>, vector<1x16x64xf32>
    %49 = vector.shape_cast %48 : vector<1x16x64xf32> to vector<16x64xf32>
    %50 = vector.shape_cast %47 : vector<16x64xf32> to vector<1x16x64xf32>
    tpu.vector_store %arg8[%c0_39, %c0_40, %c0_41], %50 {strides = array<i32>} : memref<1x16x64xf32, #tpu.memory_space<vmem>>, vector<1x16x64xf32>,
    %c4 = arith.constant 4 : index
    %c0_42 = arith.constant 0 : index
    %c0_43 = arith.constant 0 : index
    %51 = vector.load %arg4[%c4, %c0_42, %c0_43] : memref<5x64x64xf32, #tpu.memory_space<vmem>>, vector<1x64x64xf32>
    %52 = vector.shape_cast %51 : vector<1x64x64xf32> to vector<64x64xf32>
    %cst_44 = arith.constant dense<0.000000e+00> : vector<16x64xf32>
    %53 = tpu.matmul %1, %52, %cst_44 {dimension_numbers = #tpu.dot_dimension_numbers<[1], [0], [0], [1], [0, 0, 1, 1], [], []>} : vector<16x64xf32>, vector<64x64xf32>, vector<16x64xf32> -> vector<16x64xf32>
    %c4_45 = arith.constant 4 : index
    %c0_46 = arith.constant 0 : index
    %c0_47 = arith.constant 0 : index
    %54 = vector.load %arg5[%c4_45, %c0_46, %c0_47] : memref<5x1x64xf32, #tpu.memory_space<vmem>>, vector<1x1x64xf32>
    %55 = vector.shape_cast %54 : vector<1x1x64xf32> to vector<1x64xf32>
    %56 = vector.broadcast %55 : vector<1x64xf32> to vector<16x64xf32>
    %57 = arith.addf %53, %56 : vector<16x64xf32>
    %c0_48 = arith.constant 0 : index
    %c0_49 = arith.constant 0 : index
    %c0_50 = arith.constant 0 : index
    %58 = vector.load %arg9[%c0_48, %c0_49, %c0_50] : memref<1x16x64xf32, #tpu.memory_space<vmem>>, vector<1x16x64xf32>
    %59 = vector.shape_cast %58 : vector<1x16x64xf32> to vector<16x64xf32>
    %60 = vector.shape_cast %57 : vector<16x64xf32> to vector<1x16x64xf32>
    tpu.vector_store %arg9[%c0_48, %c0_49, %c0_50], %60 {strides = array<i32>} : memref<1x16x64xf32, #tpu.memory_space<vmem>>, vector<1x16x64xf32>,
    return
  }
  func.func @transform_0(%arg0: i32, %arg1: i32) -> (i32, i32, i32) {
    %c0_i32 = arith.constant 0 : i32
    %c0_i32_0 = arith.constant 0 : i32
    return %arg0, %arg1, %c0_i32 : i32, i32, i32
  }
  func.func @transform_1(%arg0: i32, %arg1: i32) -> (i32, i32, i32, i32) {
    %c0_i32 = arith.constant 0 : i32
    %c0_i32_0 = arith.constant 0 : i32
    %c0_i32_1 = arith.constant 0 : i32
    return %c0_i32, %arg0, %arg1, %c0_i32_0 : i32, i32, i32, i32
  }
  func.func @transform_2(%arg0: i32, %arg1: i32) -> (i32, i32, i32) {
    %c0_i32 = arith.constant 0 : i32
    %c0_i32_0 = arith.constant 0 : i32
    %c0_i32_1 = arith.constant 0 : i32
    %c0_i32_2 = arith.constant 0 : i32
    return %c0_i32, %c0_i32_0, %c0_i32_1 : i32, i32, i32
  }
  func.func @transform_3(%arg0: i32, %arg1: i32) -> (i32, i32, i32) {
    %c0_i32 = arith.constant 0 : i32
    %c0_i32_0 = arith.constant 0 : i32
    %c0_i32_1 = arith.constant 0 : i32
    %c0_i32_2 = arith.constant 0 : i32
    return %c0_i32, %c0_i32_0, %c0_i32_1 : i32, i32, i32
  }
  func.func @transform_4(%arg0: i32, %arg1: i32) -> (i32, i32) {
    %c0_i32 = arith.constant 0 : i32
    %c0_i32_0 = arith.constant 0 : i32
    %c0_i32_1 = arith.constant 0 : i32
    return %c0_i32, %c0_i32_0 : i32, i32
  }
  func.func @transform_5(%arg0: i32, %arg1: i32) -> (i32, i32, i32) {
    %c0_i32 = arith.constant 0 : i32
    %c0_i32_0 = arith.constant 0 : i32
    return %arg0, %arg1, %c0_i32 : i32, i32, i32
  }
  func.func @transform_6(%arg0: i32, %arg1: i32) -> (i32, i32, i32) {
    %c0_i32 = arith.constant 0 : i32
    %c0_i32_0 = arith.constant 0 : i32
    return %arg0, %arg1, %c0_i32 : i32, i32, i32
  }
  func.func @transform_7(%arg0: i32, %arg1: i32) -> (i32, i32, i32) {
    %c0_i32 = arith.constant 0 : i32
    %c0_i32_0 = arith.constant 0 : i32
    return %arg0, %arg1, %c0_i32 : i32, i32, i32
  }
}

</mosaic_0001>

<bundles_post_ra>
// kernel: tpu_custom_call.1
= control target key start
LH: loop header
LB: loop body
LE: loop exit
PB: predicated region body
PF: predicated region fallthrough
CT: control target
= control target key end

     0   :  { %s2530_s0 = inlined_call_operand.hbm [shape: f32[2,16,64], index: 0, kind: input, shape index: {}]   ;;  %s2531_s1 = inlined_call_operand.hbm [shape: f32[2,2,16,32], index: 1, kind: input, shape index: {}]   ;;  %s2532_s2 = inlined_call_operand.hbm [shape: f32[5,64,64], index: 2, kind: input, shape index: {}]   ;;  %s2533_s3 = inlined_call_operand.vmem [shape: f32[5,1,64], index: 3, kind: input, shape index: {}]   ;;  %s2534_s4 = inlined_call_operand.hbm [shape: f32[32,64], index: 4, kind: input, shape index: {}]   ;;  %s2535_s5 = inlined_call_operand.hbm [shape: f32[2,16,64], index: 5, kind: output, shape index: {0}]   ;;  %s2536_s6 = inlined_call_operand.hbm [shape: f32[2,16,64], index: 6, kind: output, shape index: {1}]   ;;  %s2537_s7 = inlined_call_operand.hbm [shape: f32[2,16,64], index: 7, kind: output, shape index: {2}]  }
   0x1   :  { %2548 = sst [smem:[#allocation27_spill]] %s2537_s7 }
   0x2   :  { %13 = vsyncpa [#allocation3], 0 }
   0x3   :  { %15 = vsyncpa [#allocation3 + $0x1], 0 }
   0x4   :  { %16 = vsyncpa [#allocation6], 0 }
   0x5   :  { %18 = vsyncpa [#allocation6 + $0x1], 0 }
   0x6   :  { %19 = vsyncpa [#allocation9], 0 }
   0x7   :  { %20 = vsyncpa [#allocation4], 0 }
   0x8   :  { %22 = vsyncpa [#allocation4 + $0x1], 0 }
   0x9   :  { %23 = vsyncpa [#allocation12], 0 }
   0xa   :  { %25 = vsyncpa [#allocation12 + $0x1], 0  ;;  %s2100_s24 = smov 0   ;;  %s2102_s25 = smov 0  }
   0xb   :  { %s2104_s26 = smov 0   ;;  %s2106_s27 = smov 0  }
   0xc   :  { %s2108_s28 = smov 0   ;;  %s2110_s29 = smov 0  }
   0xd LB: > { %2549 = sst [smem:[#allocation23_spill]] %s2020_s24  ;;  %s2131_s30 = sadd.s32 4294967295, %s2040_s29   ;;  %s2040_s29 = sphi %s2110_s29, %s31_s29   ;;  %s2036_s28 = sphi %s2108_s28, %s2578_s28   ;;  %s2032_s27 = sphi %s2106_s27, %s2577_s27   ;;  %s2028_s26 = sphi %s2104_s26, %s2576_s26   ;;  %s2024_s25 = sphi %s2102_s25, %s2575_s25   ;;  %s2020_s24 = sphi %s2100_s24, %s2574_s24  }
   0xe   : > { %s2538_s8 = sadd.s32 4294967294, %s2040_s29   ;;  %s43_s9 = sadd.s32 1, %s2036_s28 }
   0xf   : > { %s52_s10 = sadd.s32 1, %s2028_s26  ;;  %p45_p0 = scmp.ge.s32.totalorder %s43_s9, 2 }
  0x10   : > { %p59_p1 = scmp.ne.s32.totalorder %s2028_s26, %s2024_s25  ;;  %p60_p2 = scmp.eq.s32.totalorder %s2040_s29, 0 }
  0x11   : > { %p65_p3 = scmp.ne.s32.totalorder %s2024_s25, %s2020_s24  ;;  %s2580_s9 = smov (%p45_p0, %s43_s9), 0 }
  0x12   : > { %2550 = sst [smem:[#allocation24_spill]] %s2580_s9  ;;  %p2143_p4 = por %p60_p2, %p59_p1 }
  0x13   : > { %p2540_p5 = scmp.eq.s32.totalorder %s2131_s30, 0  ;;  %s47_s12 = ssub.s32 %s2036_s28, %s2580_s9 }
  0x14   : > { %s2551_s11 = scalar_select %p2143_p4, 1, 0 }
  0x15   : > { %p182_p6 = scmp.eq.s32.totalorder %s2131_s30, 1  ;;  %p50_p7 = scmp.eq.s32.totalorder %s47_s12, 0 }
  0x16   : > { %p2153_p8 = por %p2540_p5, %p65_p3  ;;  %p188_p10 = scmp.eq.s32.totalorder %s2538_s8, 1 }
  0x17   : > { %p2157_p9 = por %p182_p6, %p59_p1  ;;  %p1359_p12 = scmp.ge.s32.totalorder %s2040_s29, 1 }
  0x18   : > { %s2552_s13 = scalar_select %p2153_p8, 1, 0 }
  0x19   : > { %s2553_s14 = scalar_select %p2157_p9, 1, 0 }
  0x1a   : > { %s2164_s15 = scalar_select %p50_p7, %s2028_s26, %s52_s10  }
  0x1b   : > { %p2166_p11 = por %p188_p10, %p65_p3  ;;  %p251_p13 = scmp.lt.s32.totalorder %s2040_s29, 3 }
  0x1c   : > { %2554 = sst [smem:[#allocation25_spill]] %s2164_s15  ;;  %s2042_s18 = smov [#allocation7]  }
  0x1d   : > { %s2555_s16 = scalar_select %p2166_p11, 1, 0 }
  0x1e   : > { %p2172_p0 = pnand %p1359_p12, %p251_p13  ;;  %s263_s19 = sshll.u32 %s2042_s18, 4  ;;  %s264_s19 = int_to_ptr.vmem [resolvable:$true] %s263_s19 }
  0x1f   : > { %2556 = sst [smem:[#allocation26_spill]] %s2555_s16  ;;  %s2043_s20 = smov [#allocation8]  }
  0x20   : > { %s2557_s17 = scalar_select %p2172_p0, 1, 0 }
  0x21   : > { %p1718_p1 = pneg %p2172_p0  ;;  %s279_s21 = sshll.u32 %s2043_s20, 4  ;;  %s2184_s21 = int_to_ptr.vmem [resolvable:$true] %s279_s21 }
  0x22   : > { %s1802_s12 = scalar_lea.hbm %s2532_s2, 5120 }
  0x23   : > { %p2180_p2 = pnand %p1718_p1, %p2540_p5  ;;  %p1803_p3 = scmp.ne.s32.totalorder %s2532_s2, %s1802_s12 }
  0x24   : > { %p1809_p12 = scmp.lt.u32.totalorder %s1802_s12, %s2532_s2 }
  0x25   : > { %p1804_p6 = pneg %p2180_p2 }
  0x27   : > { %p1805_p7 = pnand %p1804_p6, %p1803_p3 }
  0x29   : > { %p1806_p10 = pneg %p1805_p7 }
  0x2b   : > { %p1811_p13 = pnand %p1809_p12, %p1806_p10 }
  0x2d   : > { %1814 = shalt.err (!%p1811_p13)
}
  0x2e   : > { %s1815_s15 = scalar_lea.vmem %s264_s19, 5120  ;;  %p1823_p9 = scmp.lt.s32.totalorder %s264_s19, %s264_s19 }
  0x2f   : > { %p1816_p1 = scmp.ne.s32.totalorder %s264_s19, %s1815_s15  ;;  %p1824_p8 = scmp.lt.s32.totalorder %s1815_s15, %s1815_s15 }
  0x31   : > { %p1818_p5 = pnand %p1816_p1, %p1804_p6  ;;  %p1825_p0 = por %p1824_p8, %p1823_p9 }
  0x33   : > { %p1819_p11 = pneg %p1818_p5 }
  0x35   : > { %p1826_p4 = pnand %p1825_p0, %p1819_p11 }
  0x37   : > { %1829 = shalt.err (!%p1826_p4)
}
  0x38   : > { %s2044_s8 = smov 128   ;;  %s2045_s23 = smov 8  }
  0x39   : > { %1721 = dma.hbm_to_vmem [thread:$0]  (!%p2180_p2), %s2532_s2, 5120, %s264_s19, [#allocation6], %s2044_s8, %s2044_s8, %s2045_s23  }
  0x3a   : > { %s1830_s20 = scalar_lea.hbm %s2534_s4, 512 }
  0x3b   : > { %p1831_p5 = scmp.ne.s32.totalorder %s2534_s4, %s1830_s20  ;;  %p1837_p9 = scmp.lt.u32.totalorder %s1830_s20, %s2534_s4 }
  0x3d   : > { %p1833_p4 = pnand %p1831_p5, %p1804_p6 }
  0x3f   : > { %p1834_p8 = pneg %p1833_p4 }
  0x41   : > { %p1839_p11 = pnand %p1837_p9, %p1834_p8 }
  0x43   : > { %1842 = shalt.err (!%p1839_p11)
}
  0x44   : > { %s1843_s19 = scalar_lea.vmem %s2184_s21, 512  ;;  %p1851_p10 = scmp.lt.s32.totalorder %s2184_s21, %s2184_s21 }
  0x45   : > { %p1844_p0 = scmp.ne.s32.totalorder %s2184_s21, %s1843_s19  ;;  %p1852_p12 = scmp.lt.s32.totalorder %s1843_s19, %s1843_s19 }
  0x47   : > { %p1846_p3 = pnand %p1844_p0, %p1804_p6  ;;  %p1853_p13 = por %p1852_p12, %p1851_p10 }
  0x49   : > { %p1847_p7 = pneg %p1846_p3 }
  0x4b   : > { %p1854_p1 = pnand %p1853_p13, %p1847_p7 }
  0x4d   : > { %1857 = shalt.err (!%p1854_p1)
}
  0x4e   : > { %1724 = dma.hbm_to_vmem [thread:$0]  (!%p2180_p2), %s2534_s4, 512, %s2184_s21, [#allocation9], %s2044_s8, %s2044_s8, %s2045_s23  }
  0x4f   : > { %p1362_p5 = scmp.ge.s32.totalorder %s2040_s29, 2 }
  0x50   : > { %s2237_s16 = sand.u32 (!%p1362_p5), 1, %s2028_s26   ;;  %s1413_s9 = sshll.u32 (!%p1362_p5), %s2036_s28, 8 }
  0x51   : > { %289 = sbr.rel (%p1362_p5) target bundleno = 120 (0x78), region = 28  ;;  %s1363_s22 = sshll.u32 (!%p1362_p5), %s2237_s16, 4 }
  0x52   : > { %s2246_s21 = scalar_lea.hbm (!%p1362_p5), %s2530_s0, %s1413_s9  ;;  %s297_s8 = scalar_lea.vmem (!%p1362_p5), [#allocation2], %s1363_s22 }
  0x53   : > { %s306_s23 = sshll.u32 (!%p1362_p5), %s297_s8, 4  ;;  %s294_s18 = scalar_lea.sflag (!%p1362_p5), [#allocation3], %s2237_s16  ;;  %s2248_s23 = int_to_ptr.vmem [resolvable:$true] %s306_s23 }
  0x54   : > { %s1858_s20 = scalar_lea.hbm (!%p1362_p5), %s2246_s21, 256  ;;  %p2559_p6 = scmp.ne.s32.totalorder (!%p1362_p5), %s2551_s11, 0 }
  0x55   : > { %p1859_p2 = scmp.ne.s32.totalorder (!%p1362_p5), %s2246_s21, %s1858_s20  ;;  %s1862_s7 = scalar_lea.hbm (!%p1362_p5), %s2530_s0, 512 }
  0x56   : > { %p1863_p9 = scmp.lt.u32.totalorder (!%p1362_p5), %s2246_s21, %s2530_s0  ;;  %p1864_p11 = scmp.lt.u32.totalorder (!%p1362_p5), %s1862_s7, %s1858_s20 }
  0x57   : > { %p1860_p4 = pnand (!%p1362_p5), %p1859_p2, %p2559_p6  ;;  %p1866_p3 = scmp.lt.u32.totalorder (!%p1362_p5), %s1858_s20, %s2246_s21 }
  0x58   : > { %p1865_p0 = por %p1864_p11, %p1863_p9 }
  0x59   : > { %p1861_p8 = pneg %p1860_p4 }
  0x5a   : > { %p1867_p7 = por %p1866_p3, %p1865_p0 }
  0x5c   : > { %p1868_p10 = pnand %p1867_p7, %p1861_p8 }
  0x5e   : > { %1871 = shalt.err (!%p1868_p10)
}
  0x5f   : > { %s1872_s22 = scalar_lea.vmem %s2248_s23, 256  ;;  %s2046_s12 = smov [#allocation2]  }
  0x60   : > { %p1873_p12 = scmp.ne.s32.totalorder %s2248_s23, %s1872_s22  ;;  %s1876_s8 = sshll.u32 %s2046_s12, 4  ;;  %s1877_s8 = int_to_ptr.vmem [resolvable:$false] %s1876_s8 }
  0x61   : > { %s1878_s15 = scalar_lea.vmem %s1877_s8, 512  ;;  %p1879_p2 = scmp.lt.s32.totalorder %s2248_s23, %s1877_s8 }
  0x62   : > { %p1874_p13 = pnand %p1873_p12, %p2559_p6  ;;  %p1880_p4 = scmp.lt.s32.totalorder %s1878_s15, %s1872_s22 }
  0x64   : > { %p1875_p1 = pneg %p1874_p13  ;;  %p1881_p9 = por %p1880_p4, %p1879_p2 }
  0x66   : > { %p1882_p11 = pnand %p1881_p9, %p1875_p1 }
  0x68   : > { %1885 = shalt.err (!%p1882_p11)
}
  0x69   : > { %s2047_s20 = smov 128   ;;  %s2048_s19 = smov 8  }
  0x6a   : > { %1697 = dma.hbm_to_vmem [thread:$0]  (%p2559_p6), %s2246_s21, 256, %s2248_s23, %s294_s18, %s2047_s20, %s2047_s20, %s2048_s19  }
  0x6b   : > { %s316_s7 = sand.u32 1, %s2040_s29   ;;  %s1366_s24 = sshll.u32 %s2237_s16, 5 }
  0x6c   : > { %s328_s12 = scalar_lea.hbm %s2531_s1, %s1413_s9  ;;  %s320_s21 = scalar_lea.vmem [#allocation5], %s1366_s24 }
  0x6d   : > { %s1698_s8 = scalar_select %p2559_p6, [#allocation0], [#allocation16] }
  0x6e   : > { %s341_s23 = sshll.u32 %s320_s21, 4  ;;  %s2049_s15 = smov 512   ;;  %s342_s23 = int_to_ptr.vmem [resolvable:$true] %s341_s23 }
  0x6f   : > { %s333_s18 = sld [smem:[%s1698_s8]]   ;;  %s2050_s20 = smov 256  }
  0x70   : > { %1699 = sst [smem:[#allocation15]] (%p2559_p6), %s2049_s15  ;;  %s2051_s19 = smov 2  }
  0x71   : > { %1700 = sst [smem:[#allocation15 + $0x1]] (%p2559_p6), %s2050_s20  ;;  %s2052_s16 = smov 128  }
  0x72   : > { %1701 = sst [smem:[#allocation15 + $0x2]] (%p2559_p6), %s2051_s19  ;;  %s2053_s24 = smov 8  }
  0x73   : > { %1702 = sst [smem:[#allocation15 + $0x3]] (%p2559_p6), %s2052_s16  ;;  %s317_s22 = scalar_lea.sflag [#allocation6], %s316_s7 }
  0x74   : > { %1703 = sst [smem:[#allocation15 + $0x4]] (%p2559_p6), %s2052_s16  ;;  %s2054_s8 = smov [#allocation14]  }
  0x75   : > { %s1369_s9 = sshll.u32 %s333_s18, 26  ;;  %1704 = sst [smem:[#allocation15 + $0x5]] (%p2559_p6), %s2053_s24 }
  0x76   : > { %s1370_s10 = sadd.s32 134217728, %s1369_s9 }
  0x77   : > { %1705 = dma.general (%p2559_p6), %s328_s12, 512, %s342_s23, %s317_s22, %s2054_s8, [#allocation15], %s1370_s10, 0  }
  0x78 PF: > { %p2560_p8 = scmp.ne.s32.totalorder %s2557_s17, 0 }
  0x79   : > { %s2300_s21 = sand.u32 (!%p2560_p8), 1, %s2024_s25   ;;  %p2561_p0 = scmp.ne.s32.totalorder (!%p2560_p8), %s2552_s13, 0 }
  0x7a   : > { %366 = sbr.rel (%p2560_p8) target bundleno = 457 (0x1c9), region = 40  ;;  %s2303_s15 = sshll.u32 (!%p2560_p8), %s2300_s21, 4 }
  0x7b   : > { %s369_s18 = scalar_lea.sflag (!%p2560_p8), [#allocation3], %s2300_s21  ;;  %s372_s20 = scalar_lea.vmem (!%p2560_p8), [#allocation2], %s2303_s15 }
  0x81   : > { %1995 = dma.done.wait (%p2561_p0), %s369_s18, 256  }
  0x82   : > { %1997 = vsyncadd (%p2561_p0), %s369_s18, 4294967040  ;;  %s377_s11 = sand.u32 1, %s2131_s30   ;;  %s1373_s17 = sshll.u32 %s2300_s21, 5 }
  0x83   : > { %s378_s7 = scalar_lea.sflag [#allocation6], %s377_s11  ;;  %s2315_s12 = scalar_lea.vmem [#allocation5], %s1373_s17 }
  0x84   : > { %1999 = dma.done.wait (%p2561_p0), %s378_s7, 512  }
  0x85   : > { %2001 = vsyncadd (%p2561_p0), %s378_s7, 4294966784  ;;  %p2562_p6 = scmp.eq.s32.totalorder %s2131_s30, 0 }
  0x87   : > { %2003 = dma.done.wait (%p2562_p6), [#allocation6], 5120   ;;  %p2563_p3 = pmov %p2562_p6 }
  0x89   : > { %2005 = vsyncadd (%p2563_p3), [#allocation6], 4294962176  ;;  %p2564_p7 = pmov %p2563_p3 }
  0x8a   : > { %p2565_p10 = pmov %p2563_p3 }
  0x8b   : > { %2007 = dma.done.wait (%p2564_p7), [#allocation9], 512  }
  0x8c   : > { %2009 = vsyncadd (%p2565_p10), [#allocation9], 4294966784  ;;  %v446_v0 = vld [vmem:[#allocation8] sm:$0xff]  ;;  %v447_v1 = vld [vmem:[#allocation8 + $0x8] sm:$0xff]  ;;  %vm450_vm0 = vcmask 261120   ;;  %vm628_vm1 = vcmask 523264  }
  0x8d   : > { %v613_v2 = vld [vmem:[#allocation7] sm:$0xff]  ;;  %v1597_v3 = vpack.c.bf16 %v447_v1, %v446_v0  ;;  %v614_v4 = vld [vmem:[#allocation7 + $0x8] sm:$0xff]  ;;  %v448_v5 = vld [vmem:[#allocation8 + $0x10] sm:$0xff]  ;;  %s2380_s10 = sshll.u32 %s2032_s27, 8  ;;  %s420_s22 = scalar_lea.vmem [#allocation10], %s2303_s15 }
  0x8e   : > { %v449_v6 = vld [vmem:[#allocation8 + $0x18] sm:$0xff]  ;;  %v1613_v7 = vpack.c.bf16 %v614_v4, %v613_v2  ;;  %v615_v9 = vld [vmem:[#allocation7 + $0x10] sm:$0xff]  ;;  %v442_v11 = vld [vmem:[%s2315_s12] sm:$0xff]  ;;  %s1122_s8 = sshll.u32 %s420_s22, 4  ;;  %s2388_s17 = scalar_lea.hbm %s2535_s5, %s2380_s10  ;;  %s2390_s8 = int_to_ptr.vmem [resolvable:$true] %s1122_s8 }
  0x8f   : > { %v1601_v8 = vpack.c.bf16 %v449_v6, %v448_v5  ;;  %v616_v10 = vld [vmem:[#allocation7 + $0x18] sm:$0xff]  ;;  %1598 = vmatprep.subr.bf16.mxu1 %v1597_v3  ;;  %1488 = vmatprep.mubr.msk.f32.mxu1 %vm450_vm0, %v442_v11  ;;  %v617_v13 = vld [vmem:[#allocation7 + $0x20] sm:$0xff]  ;;  %v618_v14 = vld [vmem:[#allocation7 + $0x28] sm:$0xff]  ;;  %s1097_s27 = scalar_lea.sflag [#allocation4], %s2300_s21  ;;  %s1886_s7 = scalar_lea.vmem %s2390_s8, 256 }
  0x90   : > { %v1617_v12 = vpack.c.bf16 %v616_v10, %v615_v9  ;;  %1614 = vmatprep.subr.bf16.mxu0 %v1613_v7  ;;  %1600 = vmatpush3.bf16.msra.mxu1 %v1597_v3  ;;  %v2333_v15 = vld [vmem:[%s372_s20] sm:$0xff]  ;;  %v1621_v16 = vpack.c.bf16 %v618_v14, %v617_v13  ;;  %v620_v18 = vld [vmem:[#allocation7 + $0x38] sm:$0xff]  ;;  %v443_v19 = vld [vmem:[%s2315_s12 + $0x8] sm:$0xff]  ;;  %p1887_p12 = scmp.ne.s32.totalorder %s2390_s8, %s1886_s7  ;;  %p2566_p13 = scmp.ne.s32.totalorder %s2553_s14, 0 }
  0x91   : > { %1616 = vmatpush3.bf16.msra.mxu0 %v1613_v7  ;;  %1602 = vmatprep.subr.bf16.mxu1 %v1601_v8  ;;  %v619_v17 = vld [vmem:[#allocation7 + $0x30] sm:$0xff]  ;;  %v713_v22 = vld [vmem:[#allocation7 + $0x40] sm:$0xff]  ;;  %v714_v23 = vld [vmem:[#allocation7 + $0x48] sm:$0xff] }
  0x92   : > { %1618 = vmatprep.subr.bf16.mxu0 %v1617_v12  ;;  %1518 = vmatprep.mubr.msk.f32.mxu0 %vm628_vm1, %v2333_v15  ;;  %v444_v20 = vld [vmem:[%s2315_s12 + $0x10] sm:$0xff]  ;;  %v1625_v21 = vpack.c.bf16 %v620_v18, %v619_v17  ;;  %v811_v24 = vld [vmem:[#allocation7 + $0x80] sm:$0xff]  ;;  %v812_v25 = vld [vmem:[#allocation7 + $0x88] sm:$0xff]  ;;  %v1629_v26 = vpack.c.bf16 %v714_v23, %v713_v22  ;;  %p1888_p1 = pnand %p1887_p12, %p2566_p13 }
  0x93   : > { %v1645_v27 = vpack.c.bf16 %v812_v25, %v811_v24  ;;  %v715_v28 = vld [vmem:[#allocation7 + $0x50] sm:$0xff]  ;;  %v716_v29 = vld [vmem:[#allocation7 + $0x58] sm:$0xff]  ;;  %v717_v36 = vld [vmem:[#allocation7 + $0x60] sm:$0xff] }
  0x94   : > { %1604 = vmatpush3.bf16.msra.mxu1 %v1601_v8  ;;  %v813_v30 = vld [vmem:[#allocation7 + $0x90] sm:$0xff]  ;;  %v814_v31 = vld [vmem:[#allocation7 + $0x98] sm:$0xff]  ;;  %v1633_v34 = vpack.c.bf16 %v716_v29, %v715_v28  ;;  %v718_v37 = vld [vmem:[#allocation7 + $0x68] sm:$0xff]  ;;  %p1889_p2 = pneg %p1888_p1 }
  0x95   : > { %1620 = vmatpush3.bf16.msra.mxu0 %v1617_v12  ;;  %1606 = vmatprep.subr.bf16.mxu1 %v1597_v3  ;;  %v445_v32 = vld [vmem:[%s2315_s12 + $0x18] sm:$0xff]  ;;  %v1649_v35 = vpack.c.bf16 %v814_v31, %v813_v30  ;;  %v815_v38 = vld [vmem:[#allocation7 + $0xa0] sm:$0xff]  ;;  %v816_v39 = vld [vmem:[#allocation7 + $0xa8] sm:$0xff]  ;;  %v1637_v40 = vpack.c.bf16 %v718_v37, %v717_v36  ;;  %s2055_s12 = smov [#allocation10]  }
  0x96   : > { %1622 = vmatprep.subr.bf16.mxu0 %v1621_v16  ;;  %v2344_v33 = vld [vmem:[%s372_s20 + $0x8] sm:$0xff]  ;;  %v1653_v41 = vpack.c.bf16 %v816_v39, %v815_v38  ;;  %v719_v42 = vld [vmem:[#allocation7 + $0x70] sm:$0xff]  ;;  %v905_v48 = vld [vmem:[#allocation7 + $0xc0] sm:$0xff]  ;;  %s1890_s13 = sshll.u32 %s2055_s12, 4  ;;  %s1891_s13 = int_to_ptr.vmem [resolvable:$false] %s1890_s13 }
  0x97   : > { %1489 = vmatmul.mubr.msk.f32.vlgmr.msra.gmra.mrb[0].mxu1 %vm450_vm0, %v443_v19  ;;  %v720_v43 = vld [vmem:[#allocation7 + $0x78] sm:$0xff]  ;;  %v817_v44 = vld [vmem:[#allocation7 + $0xb0] sm:$0xff]  ;;  %v906_v49 = vld [vmem:[#allocation7 + $0xc8] sm:$0xff]  ;;  %s1892_s23 = scalar_lea.vmem %s1891_s13, 512  ;;  %p1893_p4 = scmp.lt.s32.totalorder %s2390_s8, %s1891_s13 }
  0x98   : > { %1608 = vmatpush3.bf16.msra.mxu1 %v1597_v3  ;;  %1499 = vmatprep.mubr.msk.f32.mxu1 %vm450_vm0, %v444_v20  ;;  %v818_v45 = vld [vmem:[#allocation7 + $0xb8] sm:$0xff]  ;;  %v1641_v46 = vpack.c.bf16 %v720_v43, %v719_v42  ;;  %v1003_v50 = vld [vmem:[#allocation7 + $0x100] sm:$0xff]  ;;  %v1004_v51 = vld [vmem:[#allocation7 + $0x108] sm:$0xff]  ;;  %v1661_v52 = vpack.c.bf16 %v906_v49, %v905_v48  ;;  %p1894_p9 = scmp.lt.s32.totalorder %s1892_s23, %s1886_s7 }
  0x99   : > { %1624 = vmatpush3.bf16.msra.mxu0 %v1621_v16  ;;  %1610 = vmatprep.subr.bf16.mxu1 %v1601_v8  ;;  %v1657_v47 = vpack.c.bf16 %v818_v45, %v817_v44  ;;  %v907_v53 = vld [vmem:[#allocation7 + $0xd0] sm:$0xff]  ;;  %v908_v54 = vld [vmem:[#allocation7 + $0xd8] sm:$0xff]  ;;  %v1677_v55 = vpack.c.bf16 %v1004_v51, %v1003_v50  ;;  %v909_v59 = vld [vmem:[#allocation7 + $0xe0] sm:$0xff] }
  0x9a   : > { %1626 = vmatprep.subr.bf16.mxu0 %v1625_v21  ;;  %v1005_v56 = vld [vmem:[#allocation7 + $0x110] sm:$0xff]  ;;  %v1006_v57 = vld [vmem:[#allocation7 + $0x118] sm:$0xff]  ;;  %v1665_v58 = vpack.c.bf16 %v908_v54, %v907_v53  ;;  %v910_v60 = vld [vmem:[#allocation7 + $0xe8] sm:$0xff]  ;;  %p1895_p11 = por %p1894_p9, %p1893_p4 }
  0x9b   : > { %v1681_v61 = vpack.c.bf16 %v1006_v57, %v1005_v56  ;;  %v1007_v62 = vld [vmem:[#allocation7 + $0x120] sm:$0xff]  ;;  %v1008_v63 = vld [vmem:[#allocation7 + $0x128] sm:$0xff]  ;;  %v1669_v0 = vpack.c.bf16 %v910_v60, %v909_v59  ;;  %v911_v1 = vld [vmem:[#allocation7 + $0xf0] sm:$0xff] }
  0x9c   : > { %1612 = vmatpush3.bf16.msra.mxu1 %v1601_v8  ;;  %v912_v2 = vld [vmem:[#allocation7 + $0xf8] sm:$0xff]  ;;  %v1685_v3 = vpack.c.bf16 %v1008_v63, %v1007_v62  ;;  %v1009_v4 = vld [vmem:[#allocation7 + $0x130] sm:$0xff]  ;;  %v1383_v10 = vld [vmem:[%s2533_s3] ss:$0 sm:$0xff]  ;;  %p1896_p8 = pnand %p1895_p11, %p1889_p2 }
  0x9d   : > { %1628 = vmatpush3.bf16.msra.mxu0 %v1625_v21  ;;  %1630 = vmatprep.subr.bf16.mxu1 %v1629_v26  ;;  %v1010_v5 = vld [vmem:[#allocation7 + $0x138] sm:$0xff]  ;;  %v1673_v6 = vpack.c.bf16 %v912_v2, %v911_v1  ;;  %v1387_v19 = vld [vmem:[%s2533_s3 + $0x1] ss:$0 sm:$0xff]  ;;  %v1391_v20 = vld [vmem:[%s2533_s3 + $0x2] ss:$0 sm:$0xff] }
  0x9e   : > { %1646 = vmatprep.subr.bf16.mxu0 %v1645_v27  ;;  %v1689_v7 = vpack.c.bf16 %v1010_v5, %v1009_v4 }
  0x9f   : > { %1500 = vmatmul.mubr.msk.f32.vlgmr.msra.gmra.mrb[2].mxu1 %vm450_vm0, %v445_v32 }
  0xa0   : > { %1519 = vmatmul.mubr.msk.f32.vlgmr.msra.gmra.mrb[0].mxu0 %vm628_vm1, %v2344_v33  ;;  %1632 = vmatpush3.bf16.msra.mxu1 %v1629_v26 }
  0xa1   : > { %1648 = vmatpush3.bf16.msra.mxu0 %v1645_v27  ;;  %1634 = vmatprep.subr.bf16.mxu1 %v1633_v34 }
  0xa2   : > { %1650 = vmatprep.subr.bf16.mxu0 %v1649_v35  ;;  %1537 = vmatprep.mubr.msk.f32.mxu1 %vm628_vm1, %v2333_v15 }
  0xa3   : > { %1556 = vmatprep.mubr.msk.f32.mxu0 %vm628_vm1, %v2333_v15 }
  0xa4   : > { %1636 = vmatpush3.bf16.msra.mxu1 %v1633_v34 }
  0xa5   : > { %1652 = vmatpush3.bf16.msra.mxu0 %v1649_v35  ;;  %1638 = vmatprep.subr.bf16.mxu1 %v1637_v40 }
  0xa6   : > { %1654 = vmatprep.subr.bf16.mxu0 %v1653_v41 }
  0xa8   : > { %1640 = vmatpush3.bf16.msra.mxu1 %v1637_v40 }
  0xa9   : > { %1656 = vmatpush3.bf16.msra.mxu0 %v1653_v41  ;;  %1642 = vmatprep.subr.bf16.mxu1 %v1641_v46 }
  0xaa   : > { %1658 = vmatprep.subr.bf16.mxu0 %v1657_v47 }
  0xac   : > { %1644 = vmatpush3.bf16.msra.mxu1 %v1641_v46 }
  0xad   : > { %1660 = vmatpush3.bf16.msra.mxu0 %v1657_v47  ;;  %1662 = vmatprep.subr.bf16.mxu1 %v1661_v52 }
  0xae   : > { %1678 = vmatprep.subr.bf16.mxu0 %v1677_v55 }
  0xaf   : > { %1538 = vmatmul.mubr.msk.f32.vlgmr.msra.gmra.mrb[4].mxu1 %vm628_vm1, %v2344_v33 }
  0xb0   : > { %1557 = vmatmul.mubr.msk.f32.vlgmr.msra.gmra.mrb[2].mxu0 %vm628_vm1, %v2344_v33  ;;  %1664 = vmatpush3.bf16.msra.mxu1 %v1661_v52 }
  0xb1   : > { %1666 = vmatprep.subr.bf16.mxu1 %v1665_v58  ;;  %1680 = vmatpush3.bf16.msra.mxu0 %v1677_v55 }
  0xb2   : > { %1682 = vmatprep.subr.bf16.mxu0 %v1681_v61  ;;  %1575 = vmatprep.mubr.msk.f32.mxu1 %vm628_vm1, %v2333_v15 }
  0xb3   : > { %1594 = vmatprep.mubr.msk.f32.mxu0 %vm628_vm1, %v2333_v15 }
  0xb4   : > { %1668 = vmatpush3.bf16.msra.mxu1 %v1665_v58 }
  0xb5   : > { %1670 = vmatprep.subr.bf16.mxu1 %v1669_v0  ;;  %1684 = vmatpush3.bf16.msra.mxu0 %v1681_v61 }
  0xb6   : > { %1686 = vmatprep.subr.bf16.mxu0 %v1685_v3 }
  0xb8   : > { %1672 = vmatpush3.bf16.msra.mxu1 %v1669_v0 }
  0xb9   : > { %1674 = vmatprep.subr.bf16.mxu1 %v1673_v6  ;;  %1688 = vmatpush3.bf16.msra.mxu0 %v1685_v3 }
  0xba   : > { %1690 = vmatprep.subr.bf16.mxu0 %v1689_v7 }
  0xbc   : > { %1676 = vmatpush3.bf16.msra.mxu1 %v1673_v6 }
  0xbd   : > { %1692 = vmatpush3.bf16.msra.mxu0 %v1689_v7 }
  0xbf   : > { %1576 = vmatmul.mubr.msk.f32.vlgmr.msra.gmra.mrb[6].mxu1 %vm628_vm1, %v2344_v33 }
  0xc0   : > { %1595 = vmatmul.mubr.msk.f32.vlgmr.msra.gmra.mrb[4].mxu0 %vm628_vm1, %v2344_v33 }
 0x16a   : > { %v1490_v8 = vpop.f32.mrb[0].mxu1 }
 0x16b   : > { %v523_v9 = vpop.f32.mrb[1].mxu1 }
 0x172   : > { %v2368_v11 = vpop.f32.mrb[2].mxu1 }
 0x173   : > { %v1520_v12 = vpop.f32.mrb[0].mxu0  ;;  %v2370_v13 = vpop.f32.mrb[3].mxu1 }
 0x174   : > { %v707_v14 = vadd.f32 %v1520_v12, %v1383_v10  ;;  %v701_v15 = vpop.f32.mrb[1].mxu0 }
 0x175   : > { %v702_v16 = vadd.f32 %v1383_v10, %v701_v15 }
 0x176   : > { %v711_v17 = vmul.f32 %v1490_v8, %v707_v14 }
 0x177   : > { %v710_v18 = vmul.f32 %v702_v16, %v523_v9 }
 0x182   : > { %v1539_v21 = vpop.f32.mrb[4].mxu1 }
 0x183   : > { %v801_v22 = vadd.f32 %v1539_v21, %v1387_v19  ;;  %v1558_v23 = vpop.f32.mrb[2].mxu0  ;;  %v795_v24 = vpop.f32.mrb[5].mxu1 }
 0x184   : > { %v899_v25 = vadd.f32 %v1558_v23, %v1391_v20  ;;  %v796_v26 = vadd.f32 %v1387_v19, %v795_v24  ;;  %v893_v27 = vpop.f32.mrb[3].mxu0 }
 0x185   : > { %v805_v28 = vmul.f32 %v2368_v11, %v801_v22  ;;  %v894_v29 = vadd.f32 %v1391_v20, %v893_v27 }
 0x186   : > { %v903_v30 = vmul.f32 %v1490_v8, %v899_v25  ;;  %v804_v31 = vmul.f32 %v796_v26, %v2370_v13 }
 0x187   : > { %v807_v32 = vadd.f32 %v805_v28, %v711_v17  ;;  %v902_v33 = vmul.f32 %v894_v29, %v523_v9 }
 0x188   : > { %v806_v34 = vadd.f32 %v804_v31, %v710_v18 }
 0x189   : > { %809 = vst.msk [vmem:[%s420_s22 + $0x8] sm:$0xff] %vm628_vm1, %v807_v32 }
 0x18a   : > { %808 = vst.msk [vmem:[%s420_s22] sm:$0xff] %vm628_vm1, %v806_v34 }
 0x18b   : > { %1899 = shalt.err (!%p1896_p8)
}
 0x18c   : > { %s1900_s19 = scalar_lea.hbm %s2388_s17, 256  ;;  %s1904_s24 = scalar_lea.hbm %s2535_s5, 512 }
 0x18d   : > { %p1901_p0 = scmp.ne.s32.totalorder %s2388_s17, %s1900_s19  ;;  %p1905_p7 = scmp.lt.u32.totalorder %s2388_s17, %s2535_s5 }
 0x18e   : > { %p1906_p10 = scmp.lt.u32.totalorder %s1904_s24, %s1900_s19  ;;  %p1908_p1 = scmp.lt.u32.totalorder %s1900_s19, %s2388_s17 }
 0x18f   : > { %p1902_p6 = pnand %p1901_p0, %p2566_p13 }
 0x190   : > { %p1907_p12 = por %p1906_p10, %p1905_p7 }
 0x191   : > { %p1903_p3 = pneg %p1902_p6 }
 0x192   : > { %p1909_p2 = por %p1908_p1, %p1907_p12 }
 0x194   : > { %p1910_p4 = pnand %p1909_p2, %p1903_p3 }
 0x196   : > { %1913 = shalt.err (!%p1910_p4)
}
 0x197   : > { %s2056_s20 = smov 128   ;;  %s2057_s7 = smov 8   ;;  %v1395_v35 = vld [vmem:[%s2533_s3 + $0x3] ss:$0 sm:$0xff]  ;;  %v1399_v36 = vld [vmem:[%s2533_s3 + $0x4] ss:$0 sm:$0xff] }
 0x198   : > { %1712 = dma.vmem_to_hbm [thread:$0]  (%p2566_p13), %s2390_s8, 256, %s2388_s17, %s1097_s27, %s2056_s20, %s2056_s20, %s2057_s7   ;;  %v1577_v37 = vpop.f32.mrb[6].mxu1  ;;  %v1596_v40 = vpop.f32.mrb[4].mxu0 }
 0x199   : > { %v993_v38 = vadd.f32 %v1577_v37, %v1395_v35  ;;  %v987_v39 = vpop.f32.mrb[7].mxu1  ;;  %v1091_v42 = vadd.f32 %v1596_v40, %v1399_v36  ;;  %v1085_v43 = vpop.f32.mrb[5].mxu0  ;;  %s427_s21 = scalar_lea.vmem [#allocation11], %s2303_s15  ;;  %s434_s17 = scalar_lea.vmem [#allocation13], %s2303_s15 }
 0x19a   : > { %v988_v41 = vadd.f32 %v1395_v35, %v987_v39  ;;  %v1086_v45 = vadd.f32 %v1399_v36, %v1085_v43  ;;  %s1140_s8 = sshll.u32 %s427_s21, 4  ;;  %s1158_s27 = sshll.u32 %s434_s17, 4  ;;  %s2439_s8 = int_to_ptr.vmem [resolvable:$true] %s1140_s8  ;;  %s2442_s27 = int_to_ptr.vmem [resolvable:$true] %s1158_s27 }
 0x19b   : > { %v997_v44 = vmul.f32 %v2368_v11, %v993_v38  ;;  %1095 = vst.msk [vmem:[%s434_s17 + $0x8] sm:$0xff] %vm628_vm1, %v1091_v42  ;;  %s2437_s24 = scalar_lea.hbm %s2536_s6, %s2380_s10  ;;  %s2567_s18 = sld [smem:[#allocation27_spill]] }
 0x19c   : > { %v996_v46 = vmul.f32 %v988_v41, %v2370_v13  ;;  %1094 = vst.msk [vmem:[%s434_s17] sm:$0xff] %vm628_vm1, %v1086_v45  ;;  %s2453_s13 = scalar_lea.sflag [#allocation12], %s377_s11  ;;  %s1914_s23 = scalar_lea.vmem %s2439_s8, 256 }
 0x19d   : > { %v999_v47 = vadd.f32 %v997_v44, %v903_v30  ;;  %p1915_p9 = scmp.ne.s32.totalorder %s2439_s8, %s1914_s23  ;;  %s2058_s19 = smov [#allocation11]  }
 0x19e   : > { %v998_v48 = vadd.f32 %v996_v46, %v902_v33  ;;  %s1918_s17 = sshll.u32 %s2058_s19, 4  ;;  %s1919_s17 = int_to_ptr.vmem [resolvable:$false] %s1918_s17 }
 0x19f   : > { %1001 = vst.msk [vmem:[%s427_s21 + $0x8] sm:$0xff] %vm628_vm1, %v999_v47  ;;  %p1916_p11 = pnand %p1915_p9, %p2566_p13  ;;  %s1920_s16 = scalar_lea.vmem %s1919_s17, 512 }
 0x1a0   : > { %1000 = vst.msk [vmem:[%s427_s21] sm:$0xff] %vm628_vm1, %v998_v48  ;;  %p1921_p0 = scmp.lt.s32.totalorder %s2439_s8, %s1919_s17  ;;  %p1922_p6 = scmp.lt.s32.totalorder %s1920_s16, %s1914_s23 }
 0x1a1   : > { %s2448_s12 = scalar_lea.hbm %s2567_s18, %s2380_s10  ;;  %p1917_p8 = pneg %p1916_p11 }
 0x1a2   : > { %p1923_p3 = por %p1922_p6, %p1921_p0 }
 0x1a4   : > { %p1924_p7 = pnand %p1923_p3, %p1917_p8 }
 0x1a6   : > { %1927 = shalt.err (!%p1924_p7)
}
 0x1a7   : > { %s1928_s30 = scalar_lea.hbm %s2437_s24, 256  ;;  %s1932_s21 = scalar_lea.hbm %s2536_s6, 512 }
 0x1a8   : > { %p1929_p10 = scmp.ne.s32.totalorder %s2437_s24, %s1928_s30  ;;  %p1933_p2 = scmp.lt.u32.totalorder %s2437_s24, %s2536_s6 }
 0x1a9   : > { %p1934_p4 = scmp.lt.u32.totalorder %s1932_s21, %s1928_s30  ;;  %p1936_p11 = scmp.lt.u32.totalorder %s1928_s30, %s2437_s24 }
 0x1aa   : > { %p1930_p12 = pnand %p1929_p10, %p2566_p13 }
 0x1ab   : > { %p1935_p9 = por %p1934_p4, %p1933_p2 }
 0x1ac   : > { %p1931_p1 = pneg %p1930_p12 }
 0x1ad   : > { %p1937_p8 = por %p1936_p11, %p1935_p9 }
 0x1af   : > { %p1938_p0 = pnand %p1937_p8, %p1931_p1 }
 0x1b1   : > { %1941 = shalt.err (!%p1938_p0)
}
 0x1b2   : > { %1713 = dma.vmem_to_hbm [thread:$0]  (%p2566_p13), %s2439_s8, 256, %s2437_s24, %s2453_s13, %s2056_s20, %s2056_s20, %s2057_s7  }
 0x1b3   : > { %s1942_s22 = scalar_lea.vmem %s2442_s27, 256  ;;  %s2059_s23 = smov [#allocation13]  }
 0x1b4   : > { %p1943_p6 = scmp.ne.s32.totalorder %s2442_s27, %s1942_s22  ;;  %s1946_s19 = sshll.u32 %s2059_s23, 4  ;;  %s1947_s19 = int_to_ptr.vmem [resolvable:$false] %s1946_s19 }
 0x1b5   : > { %s1948_s17 = scalar_lea.vmem %s1947_s19, 512  ;;  %p1949_p10 = scmp.lt.s32.totalorder %s2442_s27, %s1947_s19 }
 0x1b6   : > { %p1944_p3 = pnand %p1943_p6, %p2566_p13  ;;  %p1950_p12 = scmp.lt.s32.totalorder %s1948_s17, %s1942_s22 }
 0x1b8   : > { %p1945_p7 = pneg %p1944_p3  ;;  %p1951_p1 = por %p1950_p12, %p1949_p10 }
 0x1ba   : > { %p1952_p2 = pnand %p1951_p1, %p1945_p7 }
 0x1bc   : > { %1955 = shalt.err (!%p1952_p2)
}
 0x1bd   : > { %s1956_s8 = scalar_lea.hbm %s2448_s12, 256  ;;  %s1960_s30 = scalar_lea.hbm %s2567_s18, 512 }
 0x1be   : > { %p1957_p4 = scmp.ne.s32.totalorder %s2448_s12, %s1956_s8  ;;  %p1961_p8 = scmp.lt.u32.totalorder %s2448_s12, %s2567_s18 }
 0x1bf   : > { %p1962_p0 = scmp.lt.u32.totalorder %s1960_s30, %s1956_s8  ;;  %p1964_p3 = scmp.lt.u32.totalorder %s1956_s8, %s2448_s12 }
 0x1c0   : > { %p1958_p9 = pnand %p1957_p4, %p2566_p13 }
 0x1c1   : > { %p1963_p6 = por %p1962_p0, %p1961_p8 }
 0x1c2   : > { %p1959_p11 = pneg %p1958_p9 }
 0x1c3   : > { %p1965_p7 = por %p1964_p3, %p1963_p6 }
 0x1c5   : > { %p1966_p10 = pnand %p1965_p7, %p1959_p11 }
 0x1c7   : > { %1969 = shalt.err (!%p1966_p10)
}
 0x1c8   : > { %1714 = dma.vmem_to_hbm [thread:$0]  (%p2566_p13), %s2442_s27, 256, %s2448_s12, %s2453_s13, %s2056_s20, %s2056_s20, %s2057_s7  }
 0x1c9 PF: > { %s2568_s21 = sld [smem:[#allocation23_spill]]  ;;  %s2569_s9 = sld [smem:[#allocation26_spill]] }
 0x1cf   : > { %s1173_s15 = sand.u32 1, %s2568_s21   ;;  %p2570_p12 = scmp.ne.s32.totalorder %s2569_s9, 0 }
 0x1d0   : > { %s1174_s22 = scalar_lea.sflag [#allocation4], %s1173_s15 }
 0x1d1   : > { %p1726_p1 = pnand %p1362_p5, %p2570_p12 }
 0x1d3   : > { %2011 = dma.done.wait (!%p1726_p1), %s1174_s22, 256  }
 0x1d4   : > { %2013 = vsyncadd (!%p1726_p1), %s1174_s22, 4294967040  ;;  %s2571_s14 = sadd.s32 4294967294, %s2040_s29  }
 0x1d5   : > { %s1182_s23 = sand.u32 1, %s2571_s14  }
 0x1d6   : > { %s1183_s19 = scalar_lea.sflag [#allocation12], %s1182_s23 }
 0x1d7   : > { %2015 = dma.done.wait (!%p1726_p1), %s1183_s19, 512  }
 0x1d8   : > { %2017 = vsyncadd (!%p1726_p1), %s1183_s19, 4294966784  ;;  %s31_s29 = sadd.s32 1, %s2040_s29   ;;  %s2572_s20 = sld [smem:[#allocation25_spill]] }
 0x1d9   : > { %p28_p13 = scmp.ge.s32.totalorder %s31_s29, 4   ;;  %s2573_s7 = sld [smem:[#allocation24_spill]] }
 0x1da   : > { %s2574_s24 = smov %s2024_s25  ;;  %s2575_s25 = smov %s2028_s26 }
 0x1db   : > { %s2577_s27 = smov %s2036_s28  ;;  %30 = sbr.rel (!%p28_p13) target bundleno = 13 (0xd), region = 151 }
 0x1de   : > { %s2576_s26 = smov %s2572_s20 }
 0x1df   : > { %s2578_s28 = smov %s2573_s7 }
 0x1e2   :  { %1197 = vsyncpa [#allocation3], 1 }
 0x1e3   :  { %1199 = vsyncpa [#allocation3 + $0x1], 1 }
 0x1e4   :  { %1200 = vsyncpa [#allocation6], 1 }
 0x1e5   :  { %1202 = vsyncpa [#allocation6 + $0x1], 1 }
 0x1e6   :  { %1203 = vsyncpa [#allocation9], 1 }
 0x1e7   :  { %1204 = vsyncpa [#allocation4], 1 }
 0x1e8   :  { %1206 = vsyncpa [#allocation4 + $0x1], 1 }
 0x1e9   :  { %1207 = vsyncpa [#allocation12], 1 }
 0x1ea   :  { %1209 = vsyncpa [#allocation12 + $0x1], 1 }

</bundles_post_ra>
